<compile_context>
chip_gen: v6e
topology: v6e:2x2x1
jax: 0.10.0
libtpu: 0.0.40
codegen_flags: <defaults>
</compile_context>

<pallas_src>
import jax
import jax.numpy as jnp
from jax import lax
from jax.experimental import pallas as pl
from jax.experimental.pallas import tpu as pltpu


def fusion_kernel(feat_ref, kg_ref, w_ref, b_ref, out_ref):
    """One (batch-block, query-tile) grid step.

    feat_ref: [B, TQ, Din]   query tile of the input features
    kg_ref:   [B, L, Dout]   full kg block for these batch rows (keys == values)
    w_ref:    [Din, Dout]    resident Linear weight (pre-transposed)
    b_ref:    [1, Dout]      resident Linear bias
    out_ref:  [B, TQ, Dout]  (or lane-dense [B, TQ*Dout])
    """
    B, TQ, Din = feat_ref.shape
    L, Dout = kg_ref.shape[1], kg_ref.shape[2]

    feat = feat_ref[...]
    kg = kg_ref[...]
    w = w_ref[...]
    bias = b_ref[...].astype(jnp.float32)

    # Full-precision f32 MXU passes for strict parity with the f32 PyTorch
    # module (for bf16 production inputs drop the precision override and let
    # the MXU take them natively).
    prec = lax.Precision.HIGHEST

    # ---- Linear projection: one flattened (B*TQ, Din) x (Din, Dout) matmul --
    proj = jnp.dot(feat.reshape(B * TQ, Din), w,
                   preferred_element_type=jnp.float32, precision=prec) + bias
    proj = proj.reshape(B, TQ, Dout)

    # ---- Attention scores: contract on the feature axis (no explicit kg.T) --
    scores = lax.dot_general(
        proj, kg,
        dimension_numbers=(((2,), (2,)), ((0,), (0,))),
        preferred_element_type=jnp.float32, precision=prec)          # [B, TQ, L]

    # ---- Row-wise softmax, f32 math.  Exact divide (not the approximate
    # reciprocal, which caused the previous 2e-3 mismatch). -------------------
    m = jnp.max(scores, axis=-1, keepdims=True)
    e = jnp.exp(scores - m)
    denom = jnp.sum(e, axis=-1, keepdims=True)
    alpha = e / denom                                                # [B, TQ, L]

    # TODO(synk): dropout is identity here (eval-mode semantics); training-mode
    # parity would mask alpha via pltpu.prng_seed + pltpu.stateful_bernoulli.

    # ---- Weighted sum over kg_feature ---------------------------------------
    alpha_mm = alpha if kg.dtype == jnp.float32 else alpha.astype(kg.dtype)
    out = lax.dot_general(
        alpha_mm, kg,
        dimension_numbers=(((2,), (1,)), ((0,), (0,))),
        preferred_element_type=jnp.float32, precision=prec)          # [B, TQ, Dout]

    if out_ref.ndim == 2:
        # Lane-dense store: (B, TQ*Dout) with >=128 lanes -> unmasked vst.
        out_ref[...] = out.reshape(B, TQ * Dout).astype(out_ref.dtype)
    else:
        out_ref[...] = out.astype(out_ref.dtype)


def _vmem_capacity_bytes():
    """Physical per-core VMEM; conservative 64 MiB (v7x per-TC) if unqueryable."""
    try:
        cap = getattr(pltpu.get_tpu_info(), "vmem_capacity_bytes", None)
        if cap:
            return int(cap)
    except Exception:
        pass
    return 64 * 1024 * 1024


def interactive_attention_fusion(feature, kg_feature, w, b, *,
                                 block_batch=None, q_tile=None):
    """feature: [N, L, Din], kg_feature: [N, L, Dout],
    w: [Din, Dout] (pre-transposed vs. PyTorch's [Dout, Din]), b: [Dout]."""
    N, L, Din = feature.shape
    Dout = kg_feature.shape[-1]
    assert w.shape == (Din, Dout)
    b2 = b.reshape(1, Dout)

    in_item = feature.dtype.itemsize
    kg_item = kg_feature.dtype.itemsize
    out_item = feature.dtype.itemsize
    w_item = w.dtype.itemsize

    # ---- Generation-aware VMEM plan -----------------------------------------
    vmem_cap = _vmem_capacity_bytes()
    # Scoped-VMEM request well above the 16/32 MiB defaults, with headroom for
    # compiler scratch: ~48 MiB on v7x (64 MiB phys), ~96 MiB on v5e/v6e.
    vmem_limit = int(vmem_cap * 0.75)
    budget = int(vmem_limit * 0.85)            # our data plan inside that limit

    # Resident weight/bias (constant index maps).  Large weights are single-
    # buffered to reclaim a full weight-sized chunk of VMEM; irrelevant at 32x32.
    single_buffer_w = Din * Dout * w_item >= (1 << 20)
    w_bufs = 1 if single_buffer_w else 2
    budget -= w_bufs * w_item * (Din * Dout + Dout)
    budget = max(budget, 1)

    def per_batch_bytes(tq):
        # BlockSpec double-buffers every I/O block (x2) + f32 intermediates
        # live at once inside the kernel: proj [tq,Dout], scores/e/alpha
        # ~3*[tq,L], f32 out [tq,Dout].
        io = 2 * (in_item * tq * Din + kg_item * L * Dout + out_item * tq * Dout)
        live_f32 = 4 * (2 * tq * Dout + 3 * tq * L)
        return io + live_f32

    # ---- Query tiling: keep kg resident per batch block; tile proj rows when
    # the [L, L] score/exp/alpha intermediates would blow the budget. ---------
    if q_tile is None:
        q_tile = L
        while per_batch_bytes(q_tile) > budget and q_tile > 8:
            q_tile = max(8, (q_tile // 2 + 7) // 8 * 8)
        # TODO(synk): if even a [8, L] score tile exceeds the budget (huge L),
        # a flash-style online softmax over kv tiles would be required.

    # ---- Batch blocking ------------------------------------------------------
    if block_batch is None:
        block_batch = max(1, budget // max(per_batch_bytes(q_tile), 1))
        block_batch = min(block_batch, N)
        # Keep >= 2 grid steps: enables software pipelining (DMA/compute
        # overlap) and lets the parallel axis shard across both v7x TensorCores.
        block_batch = min(block_batch, max(1, pl.cdiv(N, 2)))
        if block_batch >= 8:
            block_batch = (block_batch // 8) * 8      # sublane-friendly blocks
    block_batch = max(1, min(block_batch, N))

    # Ragged last blocks are padded on read / masked on write by Pallas.
    grid = (pl.cdiv(N, block_batch), pl.cdiv(L, q_tile))

    # Lane-dense output layout (unmasked stores) when Dout is narrower than a
    # vreg row and the folded block stays (8, 128)-aligned.
    fold_out = (Dout < 128
                and (q_tile * Dout) % 128 == 0
                and (block_batch % 8 == 0 or block_batch == N))

    w_spec_kw = dict(pipeline_mode=pl.Buffered(1)) if single_buffer_w else {}
    in_specs = [
        pl.BlockSpec((block_batch, q_tile, Din), lambda n, q: (n, q, 0)),
        pl.BlockSpec((block_batch, L, Dout), lambda n, q: (n, 0, 0)),
        # Constant index maps -> weight/bias stay resident across grid steps.
        pl.BlockSpec((Din, Dout), lambda n, q: (0, 0), **w_spec_kw),
        pl.BlockSpec((1, Dout), lambda n, q: (0, 0), **w_spec_kw),
    ]
    if fold_out:
        out_shape = jax.ShapeDtypeStruct((N, L * Dout), feature.dtype)
        out_spec = pl.BlockSpec((block_batch, q_tile * Dout), lambda n, q: (n, q))
    else:
        out_shape = jax.ShapeDtypeStruct((N, L, Dout), feature.dtype)
        out_spec = pl.BlockSpec((block_batch, q_tile, Dout), lambda n, q: (n, q, 0))

    out = pl.pallas_call(
        fusion_kernel,
        out_shape=out_shape,
        grid_spec=pltpu.PrefetchScalarGridSpec(
            num_scalar_prefetch=0,
            grid=grid,
            in_specs=in_specs,
            out_specs=out_spec,
        ),
        compiler_params=pltpu.CompilerParams(
            dimension_semantics=("parallel", "parallel"),
            vmem_limit_bytes=vmem_limit,
        ),
    )(feature, kg_feature, w, b2)

    if fold_out:
        out = out.reshape(N, L, Dout)
    return out


def reference(feature, kg_feature, w, b):
    prec = lax.Precision.HIGHEST
    proj = jnp.einsum("nld,de->nle", feature, w, precision=prec) + b
    scores = jnp.einsum("nle,nke->nlk", proj, kg_feature, precision=prec)
    alpha = jax.nn.softmax(scores, axis=-1)
    return jnp.einsum("nlk,nke->nle", alpha, kg_feature, precision=prec)


if __name__ == "__main__":
    # Module config: in_feature = out_feature = 2*D = 32; N=2, L=8.
    N, L, D_in, D_out = 2, 8, 32, 32

    key = jax.random.PRNGKey(0)
    k1, k2, k3, k4 = jax.random.split(key, 4)

    feature = jax.random.normal(k1, (N, L, D_in), dtype=jnp.float32)
    kg_feature = jax.random.normal(k2, (N, L, D_out), dtype=jnp.float32)

    # Deterministic nn.Linear-style init: U(-1/sqrt(in), 1/sqrt(in)).
    bound = 1.0 / (D_in ** 0.5)
    # Stored pre-transposed as [Din, Dout] (PyTorch keeps [Dout, Din]).
    w = jax.random.uniform(k3, (D_in, D_out), minval=-bound, maxval=bound,
                           dtype=jnp.float32)
    b = jax.random.uniform(k4, (D_out,), minval=-bound, maxval=bound,
                           dtype=jnp.float32)

    out = interactive_attention_fusion(feature, kg_feature, w, b)
    out = jax.block_until_ready(out)

    ref = reference(feature, kg_feature, w, b)
    assert out.shape == (N, L, D_out)
    assert jnp.allclose(out, ref, atol=1e-4, rtol=1e-4), "mismatch vs reference"

    print("KERNEL_OK")
</pallas_src>

<mosaic_0001>
module attributes {stable_mosaic.version = 11 : i64} {
  func.func @fusion_kernel(%arg0: i32, %arg1: i32, %arg2: memref<1x8x32xf32, #tpu.memory_space<vmem>>, %arg3: memref<1x8x32xf32, #tpu.memory_space<vmem>>, %arg4: memref<32x32xf32, #tpu.memory_space<vmem>>, %arg5: memref<1x32xf32, #tpu.memory_space<vmem>>, %arg6: memref<1x8x32xf32, #tpu.memory_space<vmem>>) attributes {dimension_semantics = [#tpu.dimension_semantics<parallel>, #tpu.dimension_semantics<parallel>], iteration_bounds = array<i64: 2, 1>, scalar_prefetch = 0 : i64, scratch_operands = 0 : i64, tpu.core_type = #tpu.core_type<tc>, window_params = [{transform_indices = @transform_0, window_bounds = array<i64: 1, 8, 32>}, {transform_indices = @transform_1, window_bounds = array<i64: 1, 8, 32>}, {pipeline_mode = #tpu.pipeline_mode<synchronous>, transform_indices = @transform_2, window_bounds = array<i64: 32, 32>}, {pipeline_mode = #tpu.pipeline_mode<synchronous>, transform_indices = @transform_3, window_bounds = array<i64: 1, 32>}, {transform_indices = @transform_4, window_bounds = array<i64: 1, 8, 32>}]} {
    %c0 = arith.constant 0 : index
    %c0_0 = arith.constant 0 : index
    %c0_1 = arith.constant 0 : index
    %0 = vector.load %arg2[%c0, %c0_0, %c0_1] : memref<1x8x32xf32, #tpu.memory_space<vmem>>, vector<1x8x32xf32>
    %c0_2 = arith.constant 0 : index
    %c0_3 = arith.constant 0 : index
    %c0_4 = arith.constant 0 : index
    %1 = vector.load %arg3[%c0_2, %c0_3, %c0_4] : memref<1x8x32xf32, #tpu.memory_space<vmem>>, vector<1x8x32xf32>
    %c0_5 = arith.constant 0 : index
    %c0_6 = arith.constant 0 : index
    %2 = vector.load %arg4[%c0_5, %c0_6] : memref<32x32xf32, #tpu.memory_space<vmem>>, vector<32x32xf32>
    %c0_7 = arith.constant 0 : index
    %c0_8 = arith.constant 0 : index
    %3 = vector.load %arg5[%c0_7, %c0_8] : memref<1x32xf32, #tpu.memory_space<vmem>>, vector<1x32xf32>
    %4 = vector.shape_cast %0 : vector<1x8x32xf32> to vector<8x32xf32>
    %cst = arith.constant dense<0.000000e+00> : vector<8x32xf32>
    %5 = tpu.matmul %4, %2, %cst {dimension_numbers = #tpu.dot_dimension_numbers<[1], [0], [0], [1], [0, 0, 1, 1], [], []>, precision = #tpu.contract_precision<fp32>} : vector<8x32xf32>, vector<32x32xf32>, vector<8x32xf32> -> vector<8x32xf32>
    %6 = vector.broadcast %3 : vector<1x32xf32> to vector<8x32xf32>
    %7 = arith.addf %5, %6 : vector<8x32xf32>
    %8 = vector.shape_cast %7 : vector<8x32xf32> to vector<1x8x32xf32>
    %cst_9 = arith.constant dense<0.000000e+00> : vector<1x8x8xf32>
    %9 = tpu.matmul %8, %1, %cst_9 {dimension_numbers = #tpu.dot_dimension_numbers<[2], [2], [1], [1], [0, 0, 0, 1, 1, 1], [0], [0]>, precision = #tpu.contract_precision<fp32>} : vector<1x8x32xf32>, vector<1x8x32xf32>, vector<1x8x8xf32> -> vector<1x8x8xf32>
    %cst_10 = arith.constant dense<0xFF800000> : vector<1x8xf32>
    %10 = vector.multi_reduction <maximumf>, %9, %cst_10 [2] : vector<1x8x8xf32> to vector<1x8xf32>
    %11 = vector.shape_cast %10 : vector<1x8xf32> to vector<1x8x1xf32>
    %12 = vector.broadcast %11 : vector<1x8x1xf32> to vector<1x8x8xf32>
    %13 = arith.subf %9, %12 : vector<1x8x8xf32>
    %14 = math.exp %13 : vector<1x8x8xf32>
    %cst_11 = arith.constant dense<0.000000e+00> : vector<1x8xf32>
    %15 = vector.multi_reduction <add>, %14, %cst_11 [2] : vector<1x8x8xf32> to vector<1x8xf32>
    %16 = vector.shape_cast %15 : vector<1x8xf32> to vector<1x8x1xf32>
    %17 = vector.broadcast %16 : vector<1x8x1xf32> to vector<1x8x8xf32>
    %18 = arith.divf %14, %17 : vector<1x8x8xf32>
    %cst_12 = arith.constant dense<0.000000e+00> : vector<1x8x32xf32>
    %19 = tpu.matmul %18, %1, %cst_12 {dimension_numbers = #tpu.dot_dimension_numbers<[2], [1], [1], [2], [0, 0, 0, 1, 1, 2], [0], [0]>, precision = #tpu.contract_precision<fp32>} : vector<1x8x8xf32>, vector<1x8x32xf32>, vector<1x8x32xf32> -> vector<1x8x32xf32>
    %c0_13 = arith.constant 0 : index
    %c0_14 = arith.constant 0 : index
    %c0_15 = arith.constant 0 : index
    %20 = vector.load %arg6[%c0_13, %c0_14, %c0_15] : memref<1x8x32xf32, #tpu.memory_space<vmem>>, vector<1x8x32xf32>
    tpu.vector_store %arg6[%c0_13, %c0_14, %c0_15], %19 {strides = array<i32>} : memref<1x8x32xf32, #tpu.memory_space<vmem>>, vector<1x8x32xf32>,
    return
  }
  func.func @transform_0(%arg0: i32, %arg1: i32) -> (i32, i32, i32) {
    %c0_i32 = arith.constant 0 : i32
    %c0_i32_0 = arith.constant 0 : i32
    return %arg0, %arg1, %c0_i32 : i32, i32, i32
  }
  func.func @transform_1(%arg0: i32, %arg1: i32) -> (i32, i32, i32) {
    %c0_i32 = arith.constant 0 : i32
    %c0_i32_0 = arith.constant 0 : i32
    %c0_i32_1 = arith.constant 0 : i32
    return %arg0, %c0_i32, %c0_i32_0 : i32, i32, i32
  }
  func.func @transform_2(%arg0: i32, %arg1: i32) -> (i32, i32) {
    %c0_i32 = arith.constant 0 : i32
    %c0_i32_0 = arith.constant 0 : i32
    %c0_i32_1 = arith.constant 0 : i32
    return %c0_i32, %c0_i32_0 : i32, i32
  }
  func.func @transform_3(%arg0: i32, %arg1: i32) -> (i32, i32) {
    %c0_i32 = arith.constant 0 : i32
    %c0_i32_0 = arith.constant 0 : i32
    %c0_i32_1 = arith.constant 0 : i32
    return %c0_i32, %c0_i32_0 : i32, i32
  }
  func.func @transform_4(%arg0: i32, %arg1: i32) -> (i32, i32, i32) {
    %c0_i32 = arith.constant 0 : i32
    %c0_i32_0 = arith.constant 0 : i32
    return %arg0, %arg1, %c0_i32 : i32, i32, i32
  }
}

</mosaic_0001>

<bundles_post_ra>
// kernel: tpu_custom_call.1
= control target key start
LH: loop header
LB: loop body
LE: loop exit
PB: predicated region body
PF: predicated region fallthrough
CT: control target
= control target key end

     0   :  { %s2621_s0 = inlined_call_operand.hbm [shape: f32[2,8,32], index: 0, kind: input, shape index: {}]   ;;  %s2622_s1 = inlined_call_operand.hbm [shape: f32[2,8,32], index: 1, kind: input, shape index: {}]   ;;  %s2623_s2 = inlined_call_operand.hbm [shape: f32[32,32], index: 2, kind: input, shape index: {}]   ;;  %s2624_s3 = inlined_call_operand.vmem [shape: f32[1,32], index: 3, kind: input, shape index: {}]   ;;  %s2625_s4 = inlined_call_operand.hbm [shape: f32[2,8,32], index: 4, kind: output, shape index: {}]  }
   0x1   :  { %2627 = sst [smem:[#allocation14_spill]] %s2623_s2 }
   0x2   :  { %9 = vsyncpa [#allocation3], 0 }
   0x3   :  { %11 = vsyncpa [#allocation3 + $0x1], 0 }
   0x4   :  { %12 = vsyncpa [#allocation6], 0 }
   0x5   :  { %14 = vsyncpa [#allocation6 + $0x1], 0 }
   0x6   :  { %15 = vsyncpa [#allocation4], 0 }
   0x7   :  { %17 = vsyncpa [#allocation4 + $0x1], 0  ;;  %s2314_s15 = smov 0   ;;  %s2316_s16 = smov 0  }
   0x8   :  { %s2318_s17 = smov 0   ;;  %s2320_s18 = smov 0  }
   0x9   :  { %s2322_s19 = smov 0   ;;  %s2324_s20 = smov 0  }
   0xa LB: > { %s2345_s21 = sadd.s32 4294967295, %s2279_s20   ;;  %s1825_s22 = sadd.s32 4294967294, %s2279_s20   ;;  %s2279_s20 = sphi %s2324_s20, %s23_s20   ;;  %s2275_s19 = sphi %s2322_s19, %s2645_s19   ;;  %s2271_s18 = sphi %s2320_s18, %s2644_s18   ;;  %s2267_s17 = sphi %s2318_s17, %s2643_s17   ;;  %s2263_s16 = sphi %s2316_s16, %s2642_s16   ;;  %s2259_s15 = sphi %s2314_s15, %s2641_s15  }
   0xb   : > { %p57_p0 = scmp.ne.s32.totalorder %s2263_s16, %s2259_s15  ;;  %p58_p1 = scmp.eq.s32.totalorder %s2345_s21, 0 }
   0xc   : > { %p157_p3 = scmp.eq.s32.totalorder %s1825_s22, 1  ;;  %p1826_p5 = scmp.ge.s32.totalorder %s2279_s20, 1 }
   0xd   : > { %p2354_p4 = por %p58_p1, %p57_p0  ;;  %p164_p7 = scmp.lt.s32.totalorder %s2279_s20, 3 }
   0xe   : > { %p2359_p6 = por %p157_p3, %p57_p0  ;;  %s2281_s26 = smov [#allocation7]  }
   0xf   : > { %p2364_p8 = pnand %p1826_p5, %p164_p7  ;;  %s176_s27 = sshll.u32 %s2281_s26, 4  ;;  %s177_s27 = int_to_ptr.vmem [resolvable:$true] %s176_s27 }
  0x10   : > { %s2629_s24 = scalar_select %p2359_p6, 1, 0 }
  0x11   : > { %p2033_p9 = pneg %p2364_p8  ;;  %s35_s29 = sadd.s32 1, %s2275_s19 }
  0x12   : > { %s2120_s30 = scalar_lea.vmem %s177_s27, 512  ;;  %p2128_p5 = scmp.lt.s32.totalorder %s177_s27, %s177_s27 }
  0x13   : > { %p2373_p11 = pnand %p2033_p9, %p58_p1  ;;  %p2121_p13 = scmp.ne.s32.totalorder %s177_s27, %s2120_s30 }
  0x14   : > { %p2129_p7 = scmp.lt.s32.totalorder %s2120_s30, %s2120_s30 }
  0x15   : > { %p2111_p12 = pneg %p2373_p11 }
  0x16   : > { %p2130_p2 = por %p2129_p7, %p2128_p5 }
  0x17   : > { %p2123_p0 = pnand %p2121_p13, %p2111_p12 }
  0x19   : > { %p2124_p3 = pneg %p2123_p0 }
  0x1b   : > { %p2131_p6 = pnand %p2130_p2, %p2124_p3 }
  0x1d   : > { %2134 = shalt.err (!%p2131_p6)
}
  0x1e   : > { %s2282_s5 = smov 128   ;;  %s2283_s6 = smov 8  }
  0x1f   : > { %s2632_s2 = sld [smem:[#allocation14_spill]]  ;;  %p37_p2 = scmp.ge.s32.totalorder %s35_s29, 2 }
  0x20   : > { %s44_s9 = sadd.s32 1, %s2267_s17  ;;  %p51_p6 = scmp.ne.s32.totalorder %s2267_s17, %s2263_s16 }
  0x21   : > { %p52_p9 = scmp.eq.s32.totalorder %s2279_s20, 0  ;;  %s2647_s29 = smov (%p37_p2, %s35_s29), 0 }
  0x22   : > { %2633 = sst [smem:[#allocation13_spill]] %s2647_s29  ;;  %p2635_p13 = scmp.eq.s32.totalorder %s2345_s21, 1 }
  0x23   : > { %p2391_p12 = por %p52_p9, %p51_p6  ;;  %s39_s12 = ssub.s32 %s2275_s19, %s2647_s29 }
  0x24   : > { %p2397_p0 = por %p2635_p13, %p51_p6  ;;  %p42_p3 = scmp.eq.s32.totalorder %s39_s12, 0 }
  0x25   : > { %2036 = dma.hbm_to_vmem [thread:$0]  (!%p2373_p11), %s2632_s2, 512, %s177_s27, [#allocation6], %s2282_s5, %s2282_s5, %s2283_s6  }
  0x26   : > { %p2049_p11 = scmp.lt.s32.totalorder %s2279_s20, 2  ;;  %s193_s13 = sand.u32 1, %s2267_s17  }
  0x27   : > { %s1829_s14 = sshll.u32 %s193_s13, 3  ;;  %s1830_s26 = sshll.u32 %s2275_s19, 7 }
  0x28   : > { %s2406_s22 = scalar_select %p42_p3, %s2267_s17, %s44_s9  }
  0x29   : > { %s203_s30 = scalar_lea.hbm %s2621_s0, %s1830_s26  ;;  %s197_s5 = scalar_lea.vmem [#allocation2], %s1829_s14 }
  0x2a   : > { %s205_s6 = sshll.u32 %s197_s5, 4  ;;  %p2414_p5 = pnand %p2049_p11, %p2391_p12  ;;  %s206_s6 = int_to_ptr.vmem [resolvable:$true] %s205_s6 }
  0x2b   : > { %s2421_s9 = scalar_lea.hbm %s2622_s1, %s1830_s26  ;;  %s212_s12 = sand.u32 1, %s2279_s20  }
  0x2c   : > { %s194_s29 = scalar_lea.sflag [#allocation3], %s193_s13  ;;  %p2137_p7 = pneg %p2414_p5 }
  0x2d   : > { %s2148_s27 = scalar_lea.vmem %s206_s6, 128  ;;  %s2284_s10 = smov [#allocation2]  }
  0x2e   : > { %p2149_p2 = scmp.ne.s32.totalorder %s206_s6, %s2148_s27  ;;  %s2153_s28 = sshll.u32 %s2284_s10, 4  ;;  %s2154_s28 = int_to_ptr.vmem [resolvable:$false] %s2153_s28 }
  0x2f   : > { %s2155_s5 = scalar_lea.vmem %s2154_s28, 256  ;;  %p2156_p12 = scmp.lt.s32.totalorder %s206_s6, %s2154_s28 }
  0x30   : > { %p2151_p6 = pnand %p2149_p2, %p2137_p7  ;;  %p2157_p13 = scmp.lt.s32.totalorder %s2155_s5, %s2148_s27 }
  0x32   : > { %p2152_p9 = pneg %p2151_p6  ;;  %p2158_p11 = por %p2157_p13, %p2156_p12 }
  0x34   : > { %p2159_p3 = pnand %p2158_p11, %p2152_p9 }
  0x36   : > { %2162 = shalt.err (!%p2159_p3)
}
  0x37   : > { %2040 = dma.hbm_to_vmem [thread:$0]  (!%p2414_p5), %s203_s30, 128, %s206_s6, %s194_s29  }
  0x38   : > { %s216_s2 = scalar_lea.vmem [#allocation5], %s1829_s14  ;;  %s213_s26 = scalar_lea.sflag [#allocation6], %s212_s12 }
  0x39   : > { %s223_s13 = sshll.u32 %s216_s2, 4  ;;  %s2285_s10 = smov [#allocation5]   ;;  %s224_s13 = int_to_ptr.vmem [resolvable:$true] %s223_s13 }
  0x3a   : > { %s2176_s8 = scalar_lea.vmem %s224_s13, 128  ;;  %s2181_s28 = sshll.u32 %s2285_s10, 4  ;;  %s2182_s28 = int_to_ptr.vmem [resolvable:$false] %s2181_s28 }
  0x3b   : > { %p2177_p2 = scmp.ne.s32.totalorder %s224_s13, %s2176_s8  ;;  %s2183_s27 = scalar_lea.vmem %s2182_s28, 256 }
  0x3c   : > { %p2184_p9 = scmp.lt.s32.totalorder %s224_s13, %s2182_s28  ;;  %p2185_p12 = scmp.lt.s32.totalorder %s2183_s27, %s2176_s8 }
  0x3d   : > { %p2179_p6 = pnand %p2177_p2, %p2137_p7 }
  0x3e   : > { %p2186_p13 = por %p2185_p12, %p2184_p9 }
  0x3f   : > { %p2180_p10 = pneg %p2179_p6 }
  0x41   : > { %p2187_p11 = pnand %p2186_p13, %p2180_p10 }
  0x43   : > { %2190 = shalt.err (!%p2187_p11)
}
  0x44   : > { %2043 = dma.hbm_to_vmem [thread:$0]  (!%p2414_p5), %s2421_s9, 128, %s224_s13, %s213_s26  }
  0x45   : > { %232 = sbr.rel (%p2364_p8) target bundleno = 1070 (0x42e), region = 36  ;;  %s2440_s29 = sand.u32 (!%p2364_p8), 1, %s2263_s16  }
  0x46   : > { %s2443_s14 = sshll.u32 (!%p2364_p8), %s2440_s29, 3  ;;  %s235_s30 = scalar_lea.sflag (!%p2364_p8), [#allocation3], %s2440_s29 }
  0x47   : > { %s238_s6 = scalar_lea.vmem (!%p2364_p8), [#allocation2], %s2443_s14 }
  0x4a   : > { %2242 = dma.done.wait (%p2354_p4), %s235_s30, 128  }
  0x4b   : > { %2244 = vsyncadd (%p2354_p4), %s235_s30, 4294967168  ;;  %s243_s25 = sand.u32 1, %s2345_s21   ;;  %s247_s9 = scalar_lea.vmem [#allocation5], %s2443_s14 }
  0x4c   : > { %s244_s7 = scalar_lea.sflag [#allocation6], %s243_s25 }
  0x4d   : > { %2246 = dma.done.wait (%p2354_p4), %s244_s7, 128  }
  0x4e   : > { %2248 = vsyncadd (%p2354_p4), %s244_s7, 4294967168 }
  0x4f   : > { %2250 = dma.done.wait (%p58_p1), [#allocation6], 512  }
  0x50   : > { %2252 = vsyncadd (%p58_p1), [#allocation6], 4294966784  ;;  %v2286_v0 = vmov 0.0   ;;  %vm2287_vm0 = vmmov 0   ;;  %vm294_vm1 = vcmask 261120   ;;  %v286_v1 = vld [vmem:[#allocation7 + $0x18] sm:$0xff] }
  0x51   : > { %1897 = vmatprep.subr.mxu0 %v2286_v0  ;;  %1908 = vmatprep.subr.mxu1 %v2286_v0  ;;  %v285_v2 = vld [vmem:[#allocation7 + $0x10] sm:$0xff]  ;;  %v284_v3 = vld [vmem:[#allocation7 + $0x8] sm:$0xff]  ;;  %v2467_v4 = vand.u32 4294901760, %v286_v1  ;;  %v283_v7 = vld [vmem:[#allocation7] sm:$0xff]  ;;  %vm1235_vm2 = vcmask 64512   ;;  %s1840_s12 = sshll.u32 %s2271_s18, 7 }
  0x52   : > { %1905 = vmatprep.mubr.msk.f32.mxu0 %vm2287_vm0, %v2286_v0  ;;  %1916 = vmatprep.mubr.msk.f32.mxu1 %vm2287_vm0, %v2286_v0  ;;  %v2469_v5 = vand.u32 4294901760, %v285_v2  ;;  %v2471_v6 = vand.u32 4294901760, %v284_v3  ;;  %v281_v8 = vld [vmem:[%s238_s6] sm:$0xff]  ;;  %v2473_v9 = vand.u32 4294901760, %v283_v7  ;;  %v2536_v32 = vld [vmem:[%s247_s9] sm:$0xff]  ;;  %s280_s5 = scalar_lea.vmem [#allocation8], %s2443_s14  ;;  %s1710_s8 = scalar_lea.hbm %s2625_s4, %s1840_s12 }
  0x53   : > { %v296_v10 = vsel %vm294_vm1, %v281_v8, 0  ;;  %1898 = vmatpush3.msra.mxu0 %v2467_v4  ;;  %v403_v11 = vsub.f32 %v286_v1, %v2467_v4  ;;  %v787_v33 = vsel %vm294_vm1, %v2536_v32, 0  ;;  %v1838_v42 = vld [vmem:[%s2624_s3] ss:$0 sm:$0xff]  ;;  %v1281_v1 = vand.u32 4294901760, %v2536_v32  ;;  %s1712_s2 = sshll.u32 %s280_s5, 4  ;;  %s1713_s2 = int_to_ptr.vmem [resolvable:$true] %s1712_s2 }
  0x54   : > { %v2478_v12 = vand.u32 4294901760, %v296_v10  ;;  %v410_v13 = vsub.f32 %v285_v2, %v2469_v5  ;;  %v417_v14 = vsub.f32 %v284_v3, %v2471_v6  ;;  %1899 = vmatprep.subr.mxu0 %v2286_v0  ;;  %v424_v15 = vsub.f32 %v283_v7, %v2473_v9  ;;  %s1698_s10 = scalar_lea.sflag [#allocation4], %s2440_s29  ;;  %s2191_s28 = scalar_lea.vmem %s1713_s2, 128 }
  0x55   : > { %1900 = vmatpush3.msra.mxu0 %v2469_v5  ;;  %v404_v16 = vand.u32 4294901760, %v403_v11  ;;  %v820_v34 = vand.u32 4294901760, %v787_v33  ;;  %p2192_p1 = scmp.ne.s32.totalorder %s1713_s2, %s2191_s28  ;;  %s2288_s27 = smov [#allocation8]  }
  0x56   : > { %v368_v17 = vsub.f32 %v296_v10, %v2478_v12  ;;  %v411_v18 = vand.u32 4294901760, %v410_v13  ;;  %v418_v19 = vand.u32 4294901760, %v417_v14  ;;  %1901 = vmatprep.subr.mxu0 %v2286_v0  ;;  %v425_v20 = vand.u32 4294901760, %v424_v15  ;;  %s2195_s18 = sshll.u32 %s2288_s27, 4  ;;  %s2196_s18 = int_to_ptr.vmem [resolvable:$false] %s2195_s18 }
  0x57   : > { %1902 = vmatpush3.msra.mxu0 %v2471_v6  ;;  %v405_v21 = vsub.f32 %v403_v11, %v404_v16  ;;  %v897_v35 = vsub.f32 %v787_v33, %v820_v34  ;;  %p2193_p4 = pnand %p2192_p1, %p2397_p0  ;;  %s2197_s14 = scalar_lea.vmem %s2196_s18, 256 }
  0x58   : > { %v369_v22 = vand.u32 4294901760, %v368_v17  ;;  %v412_v23 = vsub.f32 %v410_v13, %v411_v18  ;;  %v419_v24 = vsub.f32 %v417_v14, %v418_v19  ;;  %1903 = vmatprep.subr.mxu0 %v2286_v0  ;;  %v426_v28 = vsub.f32 %v424_v15, %v425_v20  ;;  %p2198_p10 = scmp.lt.s32.totalorder %s1713_s2, %s2196_s18  ;;  %p2199_p5 = scmp.lt.s32.totalorder %s2197_s14, %s2191_s28 }
  0x59   : > { %1904 = vmatpush3.msra.mxu0 %v2473_v9  ;;  %v406_v25 = vand.u32 4294901760, %v405_v21  ;;  %v898_v36 = vand.u32 4294901760, %v897_v35  ;;  %p2194_p8 = pneg %p2193_p4 }
  0x5a   : > { %v370_v26 = vsub.f32 %v368_v17, %v369_v22  ;;  %v413_v27 = vand.u32 4294901760, %v412_v23  ;;  %1919 = vmatprep.subr.mxu0 %v2286_v0  ;;  %v420_v30 = vand.u32 4294901760, %v419_v24  ;;  %v427_v31 = vand.u32 4294901760, %v426_v28  ;;  %p2200_p7 = por %p2199_p5, %p2198_p10 }
  0x5b   : > { %1909 = vmatpush3.msra.mxu1 %v406_v25  ;;  %v899_v37 = vsub.f32 %v897_v35, %v898_v36  ;;  %v1358_v25 = vsub.f32 %v2536_v32, %v1281_v1 }
  0x5c   : > { %v371_v29 = vand.u32 4294901760, %v370_v26  ;;  %1910 = vmatprep.subr.mxu1 %v2286_v0  ;;  %p2201_p3 = pnand %p2200_p7, %p2194_p8 }
  0x5d   : > { %1911 = vmatpush3.msra.mxu1 %v413_v27  ;;  %v900_v38 = vand.u32 4294901760, %v899_v37  ;;  %v1359_v26 = vand.u32 4294901760, %v1358_v25 }
  0x5e   : > { %1906 = vmatmul.mubr.f32.vlgmr.msra.gmra.mxu0 %v371_v29  ;;  %1912 = vmatprep.subr.mxu1 %v2286_v0 }
  0x5f   : > { %1920 = vmatpush3.msra.mxu0 %v403_v11  ;;  %1913 = vmatpush3.msra.mxu1 %v420_v30  ;;  %v1360_v27 = vsub.f32 %v1358_v25, %v1359_v26 }
  0x60   : > { %1921 = vmatprep.subr.mxu0 %v2286_v0  ;;  %1914 = vmatprep.subr.mxu1 %v2286_v0 }
  0x61   : > { %1922 = vmatpush3.msra.mxu0 %v410_v13  ;;  %1915 = vmatpush3.msra.mxu1 %v427_v31  ;;  %v1361_v28 = vand.u32 4294901760, %v1360_v27 }
  0x62   : > { %1923 = vmatprep.subr.mxu0 %v2286_v0  ;;  %1917 = vmatmul.mubr.f32.vlgmr.msra.gmra.mxu1 %v2478_v12 }
  0x63   : > { %1924 = vmatpush3.msra.mxu0 %v417_v14  ;;  %1930 = vmatprep.subr.mxu1 %v2286_v0 }
  0x64   : > { %1925 = vmatprep.subr.mxu0 %v2286_v0  ;;  %1931 = vmatpush3.msra.mxu1 %v2467_v4 }
  0x65   : > { %1926 = vmatpush3.msra.mxu0 %v424_v15  ;;  %1927 = vmatprep.mubr.msk.f32.mxu0 %vm2287_vm0, %v2286_v0 }
  0x66   : > { %1932 = vmatprep.subr.mxu1 %v2286_v0  ;;  %1941 = vmatprep.subr.mxu0 %v2286_v0 }
  0x67   : > { %1928 = vmatmul.mubr.f32.vlgmr.msra.gmra.mxu0 %v368_v17  ;;  %1933 = vmatpush3.msra.mxu1 %v2469_v5 }
  0x68   : > { %1942 = vmatpush3.msra.mxu0 %v404_v16  ;;  %1934 = vmatprep.subr.mxu1 %v2286_v0 }
  0x69   : > { %1943 = vmatprep.subr.mxu0 %v2286_v0  ;;  %1935 = vmatpush3.msra.mxu1 %v2471_v6 }
  0x6a   : > { %1944 = vmatpush3.msra.mxu0 %v411_v18  ;;  %1936 = vmatprep.subr.mxu1 %v2286_v0 }
  0x6b   : > { %1945 = vmatprep.subr.mxu0 %v2286_v0  ;;  %1937 = vmatpush3.msra.mxu1 %v2473_v9 }
  0x6c   : > { %1938 = vmatprep.mubr.msk.f32.mxu1 %vm2287_vm0, %v2286_v0  ;;  %1946 = vmatpush3.msra.mxu0 %v418_v19 }
  0x6d   : > { %1939 = vmatmul.mubr.f32.vlgmr.msra.gmra.mxu1 %v369_v22  ;;  %1947 = vmatprep.subr.mxu0 %v2286_v0 }
  0x6e   : > { %1952 = vmatprep.subr.mxu1 %v2286_v0  ;;  %1948 = vmatpush3.msra.mxu0 %v425_v20 }
  0x6f   : > { %1949 = vmatprep.mubr.msk.f32.mxu0 %vm2287_vm0, %v2286_v0  ;;  %1953 = vmatpush3.msra.mxu1 %v2467_v4 }
  0x70   : > { %1950 = vmatmul.mubr.f32.vlgmr.msra.gmra.mxu0 %v2478_v12  ;;  %1954 = vmatprep.subr.mxu1 %v2286_v0 }
  0x71   : > { %1960 = vmatprep.mubr.msk.f32.mxu1 %vm2287_vm0, %v2286_v0  ;;  %1955 = vmatpush3.msra.mxu1 %v2469_v5 }
  0x72   : > { %1963 = vmatprep.subr.mxu0 %v2286_v0  ;;  %1956 = vmatprep.subr.mxu1 %v2286_v0 }
  0x73   : > { %1965 = vmatprep.mubr.msk.f32.mxu0 %vm2287_vm0, %v2286_v0  ;;  %1957 = vmatpush3.msra.mxu1 %v2471_v6 }
  0x74   : > { %1958 = vmatprep.subr.mxu1 %v2286_v0  ;;  %1964 = vmatpush3.xpose.msra.mxu0 %v820_v34 }
  0x75   : > { %1959 = vmatpush3.msra.mxu1 %v2473_v9  ;;  %1973 = vmatprep.subr.mxu0 %v2286_v0 }
  0x76   : > { %1961 = vmatmul.mubr.f32.vlgmr.msra.gmra.mxu1 %v2478_v12  ;;  %1968 = vmatprep.subr.mxu1 %v2286_v0 }
  0x77   : > { %1970 = vmatprep.mubr.msk.f32.mxu1 %vm2287_vm0, %v2286_v0  ;;  %1969 = vmatpush3.xpose.msra.mxu1 %v900_v38 }
  0x78   : > { %1978 = vmatprep.subr.mxu1 %v2286_v0 }
 0x11e   : > { %v373_v39 = vpop.f32.mrf.mxu0 }
 0x11f   : > { %v374_v45 = vadd.f32 %v1838_v42, %v373_v39 }
 0x120   : > { %v1907_v40 = vpop.f32.mrf.mxu0 }
 0x122   : > { %v464_v41 = vpop.f32.mrf.mxu1 }
 0x123   : > { %v465_v47 = vadd.f32 %v464_v41, %v374_v45 }
 0x124   : > { %v1918_v43 = vpop.f32.mrf.mxu1 }
 0x127   : > { %v544_v44 = vpop.f32.mrf.mxu0 }
 0x128   : > { %v545_v50 = vadd.f32 %v544_v44, %v465_v47 }
 0x129   : > { %v1929_v46 = vpop.f32.mrf.mxu0 }
 0x12d   : > { %v621_v48 = vpop.f32.mrf.mxu1 }
 0x12e   : > { %v622_v52 = vadd.f32 %v621_v48, %v545_v50 }
 0x12f   : > { %v1940_v49 = vpop.f32.mrf.mxu1 }
 0x130   : > { %v704_v51 = vpop.f32.mrf.mxu0 }
 0x131   : > { %v705_v54 = vadd.f32 %v704_v51, %v622_v52 }
 0x132   : > { %v1951_v53 = vpop.f32.mrf.mxu0 }
 0x136   : > { %v779_v55 = vpop.f32.mrf.mxu1 }
 0x137   : > { %v780_v56 = vadd.f32 %v779_v55, %v705_v54 }
 0x138   : > { %v1962_v57 = vpop.f32.mrf.mxu1 }
 0x139   : > { %v784_v58 = vsel %vm294_vm1, %v780_v56, 0 }
 0x13a   : > { %v855_v59 = vand.u32 4294901760, %v784_v58 }
 0x13c   : > { %v856_v60 = vsub.f32 %v784_v58, %v855_v59  ;;  %1971 = vmatmul.mubr.f32.vlgmr.msra.gmra.mxu1 %v855_v59 }
 0x13d   : > { %1979 = vmatpush3.xpose.msra.mxu1 %v820_v34  ;;  %1980 = vmatprep.mubr.msk.f32.mxu1 %vm2287_vm0, %v2286_v0 }
 0x13e   : > { %v857_v61 = vand.u32 4294901760, %v856_v60  ;;  %1988 = vmatprep.subr.mxu1 %v2286_v0 }
 0x140   : > { %1981 = vmatmul.mubr.f32.vlgmr.msra.gmra.mxu1 %v857_v61  ;;  %v858_v62 = vsub.f32 %v856_v60, %v857_v61 }
 0x141   : > { %1989 = vmatpush3.xpose.msra.mxu1 %v820_v34  ;;  %1990 = vmatprep.mubr.msk.f32.mxu1 %vm2287_vm0, %v2286_v0 }
 0x142   : > { %v859_v63 = vand.u32 4294901760, %v858_v62  ;;  %1998 = vmatprep.subr.mxu1 %v2286_v0 }
 0x144   : > { %1966 = vmatmul.mubr.f32.vlgmr.msra.gmra.mxu0 %v859_v63  ;;  %1991 = vmatmul.mubr.f32.vlgmr.msra.gmra.mxu1 %v855_v59 }
 0x145   : > { %1974 = vmatpush3.xpose.msra.mxu0 %v897_v35  ;;  %1975 = vmatprep.mubr.msk.f32.mxu0 %vm2287_vm0, %v2286_v0 }
 0x146   : > { %1983 = vmatprep.subr.mxu0 %v2286_v0  ;;  %2000 = vmatprep.mubr.msk.f32.mxu1 %vm2287_vm0, %v2286_v0 }
 0x147   : > { %1999 = vmatpush3.msra.mxu1 %v1361_v28 }
 0x148   : > { %1976 = vmatmul.mubr.f32.vlgmr.msra.gmra.mxu0 %v856_v60  ;;  %2008 = vmatprep.subr.mxu1 %v2286_v0 }
 0x149   : > { %1984 = vmatpush3.xpose.msra.mxu0 %v898_v36  ;;  %1985 = vmatprep.mubr.msk.f32.mxu0 %vm2287_vm0, %v2286_v0 }
 0x14a   : > { %1993 = vmatprep.subr.mxu0 %v2286_v0 }
 0x14c   : > { %1986 = vmatmul.mubr.f32.vlgmr.msra.gmra.mxu0 %v855_v59 }
 0x14d   : > { %1994 = vmatpush3.msra.mxu0 %v1281_v1  ;;  %1995 = vmatprep.mubr.msk.f32.mxu0 %vm2287_vm0, %v2286_v0 }
 0x14e   : > { %2003 = vmatprep.subr.mxu0 %v2286_v0 }
 0x1fc   : > { %v937_v2 = vpop.f32.mrf.mxu1 }
 0x1fe   : > { %v1972_v3 = vpop.f32.mrf.mxu1 }
 0x200   : > { %v1085_v4 = vpop.f32.mrf.mxu1 }
 0x202   : > { %v1982_v5 = vpop.f32.mrf.mxu1 }
 0x204   : > { %v861_v6 = vpop.f32.mrf.mxu0  ;;  %v1231_v7 = vpop.f32.mrf.mxu1 }
 0x205   : > { %v938_v10 = vadd.f32 %v937_v2, %v861_v6 }
 0x206   : > { %v1967_v8 = vpop.f32.mrf.mxu0  ;;  %v1992_v9 = vpop.f32.mrf.mxu1 }
 0x208   : > { %v1011_v11 = vpop.f32.mrf.mxu0 }
 0x209   : > { %v1012_v12 = vadd.f32 %v1011_v11, %v938_v10 }
 0x20a   : > { %v1977_v13 = vpop.f32.mrf.mxu0 }
 0x20b   : > { %v1086_v14 = vadd.f32 %v1085_v4, %v1012_v12 }
 0x20c   : > { %v1159_v15 = vpop.f32.mrf.mxu0 }
 0x20d   : > { %v1160_v16 = vadd.f32 %v1159_v15, %v1086_v14 }
 0x20e   : > { %v1987_v17 = vpop.f32.mrf.mxu0 }
 0x20f   : > { %v1232_v18 = vadd.f32 %v1231_v7, %v1160_v16 }
 0x211   : > { %v1236_v19 = vsel %vm1235_vm2, %v1232_v18, -inf }
 0x212   : > { %1237 = vmax.xlane.f32.xlu0 %v1236_v19 }
 0x29b   : > { %v1238_v20 = vpop.xlane.xlu0 %1237 }
 0x29c   : > { %v1239_v21 = vsub.f32 %v1232_v18, %v1238_v20 }
 0x29e   : > { %v1240_v22 = vmul.f32 1.442695, %v1239_v21 }
 0x2a0   : > { %2105 = vpow2.f32 %v1240_v22 }
 0x2ad   : > { %v2106_v23 = vpop.eup %2105 }
 0x2ae   : > { %v1242_v24 = vsel %vm1235_vm2, %v2106_v23, 0.0 }
 0x2af   : > { %1243 = vadd.xlane.f32.xlu0 %v1242_v24 }
 0x338   : > { %v1244_v29 = vpop.xlane.xlu0 %1243 }
 0x339   : > { %2107 = vrcp.f32 %v1244_v29 }
 0x346   : > { %v2108_v30 = vpop.eup %2107 }
 0x347   : > { %v1246_v31 = vmul.f32 %v2108_v30, %v2106_v23 }
 0x349   : > { %v1248_v33 = vsel %vm1235_vm2, %v1246_v31, 0 }
 0x34a   : > { %v1316_v34 = vand.u32 4294901760, %v1248_v33 }
 0x34c   : > { %v1317_v35 = vsub.f32 %v1248_v33, %v1316_v34  ;;  %2001 = vmatmul.mubr.f32.vlgmr.msra.gmra.mxu1 %v1316_v34 }
 0x34d   : > { %2009 = vmatpush3.msra.mxu1 %v1281_v1  ;;  %2010 = vmatprep.mubr.msk.f32.mxu1 %vm2287_vm0, %v2286_v0 }
 0x34e   : > { %v1318_v32 = vand.u32 4294901760, %v1317_v35  ;;  %2018 = vmatprep.subr.mxu1 %v2286_v0 }
 0x350   : > { %2011 = vmatmul.mubr.f32.vlgmr.msra.gmra.mxu1 %v1318_v32  ;;  %v1319_v36 = vsub.f32 %v1317_v35, %v1318_v32 }
 0x351   : > { %2019 = vmatpush3.msra.mxu1 %v1281_v1  ;;  %2020 = vmatprep.mubr.msk.f32.mxu1 %vm2287_vm0, %v2286_v0 }
 0x352   : > { %v1320_v37 = vand.u32 4294901760, %v1319_v36 }
 0x354   : > { %1996 = vmatmul.mubr.f32.vlgmr.msra.gmra.mxu0 %v1320_v37  ;;  %2021 = vmatmul.mubr.f32.vlgmr.msra.gmra.mxu1 %v1316_v34 }
 0x355   : > { %2004 = vmatpush3.msra.mxu0 %v1358_v25  ;;  %2005 = vmatprep.mubr.msk.f32.mxu0 %vm2287_vm0, %v2286_v0 }
 0x356   : > { %2013 = vmatprep.subr.mxu0 %v2286_v0 }
 0x358   : > { %2006 = vmatmul.mubr.f32.vlgmr.msra.gmra.mxu0 %v1317_v35 }
 0x359   : > { %2014 = vmatpush3.msra.mxu0 %v1359_v26  ;;  %2015 = vmatprep.mubr.msk.f32.mxu0 %vm2287_vm0, %v2286_v0 }
 0x35c   : > { %2016 = vmatmul.mubr.f32.vlgmr.msra.gmra.mxu0 %v1316_v34 }
 0x40c   : > { %v1398_v38 = vpop.f32.mrf.mxu1 }
 0x40e   : > { %v2002_v39 = vpop.f32.mrf.mxu1 }
 0x410   : > { %v1546_v40 = vpop.f32.mrf.mxu1 }
 0x412   : > { %v2012_v41 = vpop.f32.mrf.mxu1 }
 0x414   : > { %v1322_v42 = vpop.f32.mrf.mxu0  ;;  %v1692_v43 = vpop.f32.mrf.mxu1 }
 0x415   : > { %v1399_v46 = vadd.f32 %v1398_v38, %v1322_v42 }
 0x416   : > { %v1997_v44 = vpop.f32.mrf.mxu0  ;;  %v2022_v45 = vpop.f32.mrf.mxu1 }
 0x418   : > { %v1472_v47 = vpop.f32.mrf.mxu0 }
 0x419   : > { %v1473_v48 = vadd.f32 %v1472_v47, %v1399_v46 }
 0x41a   : > { %v2007_v49 = vpop.f32.mrf.mxu0 }
 0x41b   : > { %v1547_v50 = vadd.f32 %v1546_v40, %v1473_v48 }
 0x41c   : > { %v1620_v51 = vpop.f32.mrf.mxu0 }
 0x41d   : > { %v1621_v0 = vadd.f32 %v1620_v51, %v1547_v50 }
 0x41e   : > { %v2017_v52 = vpop.f32.mrf.mxu0 }
 0x41f   : > { %v1693_v53 = vadd.f32 %v1692_v43, %v1621_v0 }
 0x421   : > { %1696 = vst.msk [vmem:[%s280_s5] sm:$0xff] %vm294_vm1, %v1693_v53 }
 0x422   : > { %2204 = shalt.err (!%p2201_p3)
}
 0x423   : > { %s2205_s30 = scalar_lea.hbm %s1710_s8, 128  ;;  %s2209_s25 = scalar_lea.hbm %s2625_s4, 256 }
 0x424   : > { %p2206_p2 = scmp.ne.s32.totalorder %s1710_s8, %s2205_s30  ;;  %p2210_p12 = scmp.lt.s32.totalorder %s1710_s8, %s2625_s4 }
 0x425   : > { %p2211_p13 = scmp.lt.s32.totalorder %s2209_s25, %s2205_s30 }
 0x426   : > { %p2207_p6 = pnand %p2206_p2, %p2397_p0 }
 0x427   : > { %p2212_p11 = por %p2211_p13, %p2210_p12 }
 0x428   : > { %p2208_p9 = pneg %p2207_p6 }
 0x42a   : > { %p2213_p1 = pnand %p2212_p11, %p2208_p9 }
 0x42c   : > { %2216 = shalt.err (!%p2213_p1)
}
 0x42d   : > { %2031 = dma.vmem_to_hbm [thread:$0]  (%p2397_p0), %s1713_s2, 128, %s1710_s8, %s1698_s10  }
 0x42e PF: > { %s1724_s21 = sand.u32 1, %s2259_s15   ;;  %p2638_p4 = scmp.ne.s32.totalorder %s2629_s24, 0 }
 0x42f   : > { %p2639_p8 = scmp.ge.s32.totalorder %s2279_s20, 2  ;;  %s1725_s23 = scalar_lea.sflag [#allocation4], %s1724_s21 }
 0x431   : > { %p2045_p10 = pnand %p2639_p8, %p2638_p4 }
 0x433   : > { %p2046_p5 = pneg %p2045_p10 }
 0x435   : > { %2254 = dma.done.wait (%p2046_p5), %s1725_s23, 128  }
 0x436   : > { %2256 = vsyncadd (%p2046_p5), %s1725_s23, 4294967168  ;;  %s23_s20 = sadd.s32 1, %s2279_s20   ;;  %s2640_s11 = sld [smem:[#allocation13_spill]] }
 0x437   : > { %p20_p7 = scmp.ge.s32.totalorder %s23_s20, 4   ;;  %s2641_s15 = smov %s2263_s16 }
 0x438   : > { %s2642_s16 = smov %s2267_s17  ;;  %s2643_s17 = smov %s2406_s22 }
 0x439   : > { %s2644_s18 = smov %s2275_s19  ;;  %22 = sbr.rel (!%p20_p7) target bundleno = 10 (0xa), region = 98 }
 0x43c   : > { %s2645_s19 = smov %s2640_s11 }
 0x43e   :  { %1730 = vsyncpa [#allocation3], 1 }
 0x43f   :  { %1732 = vsyncpa [#allocation3 + $0x1], 1 }
 0x440   :  { %1733 = vsyncpa [#allocation6], 1 }
 0x441   :  { %1735 = vsyncpa [#allocation6 + $0x1], 1 }
 0x442   :  { %1736 = vsyncpa [#allocation4], 1 }
 0x443   :  { %1738 = vsyncpa [#allocation4 + $0x1], 1 }

</bundles_post_ra>
